<compile_context>
chip_gen: v6e
topology: v6e:2x2x1
jax: 0.10.0
libtpu: 0.0.40
codegen_flags: <defaults>
</compile_context>

<pallas_src>
import jax
import jax.numpy as jnp
from jax.experimental import pallas as pl
from jax.experimental.pallas import tpu as pltpu  # noqa: F401  (TPU namespace)

EPS = 1e-5


def _round_up(n, m):
    return ((n + m - 1) // m) * m


def _build_kernel(d_in_pad, h_pad):
    """Returns the MLP forward kernel closed over static slab offsets."""

    def kernel(x_ref, w_ref, p_ref, o_ref):
        # x: [B, d_in_pad]   w: [d_in_pad + 2*h_pad, h_pad]   p: [5, h_pad]
        x = x_ref[...].astype(jnp.float32)
        inv_b = 1.0 / x.shape[0]

        # Static, sublane-aligned (multiples of 8) slices out of the weight slab.
        w1 = w_ref[0:d_in_pad, :]                               # [d_in_pad, h_pad]
        w2 = w_ref[d_in_pad:d_in_pad + h_pad, :]                # [h_pad, h_pad]
        w3 = w_ref[d_in_pad + h_pad:d_in_pad + 2 * h_pad, :]    # [h_pad, h_pad]

        g1 = p_ref[0:1, :]
        be1 = p_ref[1:2, :]
        g2 = p_ref[2:3, :]
        be2 = p_ref[3:4, :]
        b3 = p_ref[4:5, :]

        # ---- linear1 (bias omitted: cancels under training-mode BN) ----
        h = jnp.dot(x, w1, preferred_element_type=jnp.float32)

        # ---- BatchNorm1d #1 (training mode, biased var) + ReLU, single-pass ----
        s = jnp.sum(h, axis=0, keepdims=True)
        ss = jnp.sum(h * h, axis=0, keepdims=True)
        mu = s * inv_b
        var = jnp.maximum(ss * inv_b - mu * mu, 0.0)
        scale = g1 * jax.lax.rsqrt(var + EPS)
        shift = be1 - mu * scale
        h = jnp.maximum(h * scale + shift, 0.0)

        # ---- linear2 (bias omitted for the same reason) ----
        h = jnp.dot(h, w2, preferred_element_type=jnp.float32)

        # ---- BatchNorm1d #2 + ReLU, single-pass stats ----
        s = jnp.sum(h, axis=0, keepdims=True)
        ss = jnp.sum(h * h, axis=0, keepdims=True)
        mu = s * inv_b
        var = jnp.maximum(ss * inv_b - mu * mu, 0.0)
        scale = g2 * jax.lax.rsqrt(var + EPS)
        shift = be2 - mu * scale
        h = jnp.maximum(h * scale + shift, 0.0)

        # ---- linear3 (H -> 6, zero-padded to h_pad lanes) + bias ----
        out = jnp.dot(h, w3, preferred_element_type=jnp.float32) + b3
        o_ref[...] = out.astype(o_ref.dtype)

    return kernel


def mlp_forward(x, params):
    """params = (w_slab, p_slab, d_in_pad, h_pad, n_out)."""
    w_slab, p_slab, d_in_pad, h_pad, n_out = params
    b, d_in = x.shape
    if d_in < d_in_pad:  # zero-pad input features to the slab's row layout
        x = jnp.pad(x, ((0, 0), (0, d_in_pad - d_in)))

    kernel = _build_kernel(d_in_pad, h_pad)
    full = lambda a: pl.BlockSpec(a.shape, lambda: (0,) * a.ndim)

    out = pl.pallas_call(
        kernel,
        out_shape=jax.ShapeDtypeStruct((b, h_pad), jnp.float32),
        in_specs=[full(x), full(w_slab), full(p_slab)],
        out_specs=pl.BlockSpec((b, h_pad), lambda: (0, 0)),
    )(x, w_slab, p_slab)

    # Lane-dense output slab -> logical [B, 6]; torch .squeeze() drops size-1 dims.
    return jnp.squeeze(out[:, :n_out])


def init_params(key, input_size, interm, n_out=6):
    """Build packed, kernel-friendly parameter slabs.

    Linear weights follow PyTorch [out, in] convention and are transposed +
    zero-padded once here (host-side layout plumbing).  b1/b2 are not
    materialised: they are redundant under training-mode BatchNorm.
    """
    d_in_pad = _round_up(input_size, 8)
    h_pad = _round_up(max(interm, n_out, 128), 128)

    ks = jax.random.split(key, 4)
    w1 = jax.random.normal(ks[0], (interm, input_size), jnp.float32) * 0.1
    w2 = jax.random.normal(ks[1], (interm, interm), jnp.float32) * 0.1
    w3 = jax.random.normal(ks[2], (n_out, interm), jnp.float32) * 0.1
    b3 = jax.random.normal(ks[3], (n_out,), jnp.float32) * 0.1

    # Packed weight slab: rows [0:d_in_pad) = W1^T, [d_in_pad:+h_pad) = W2^T,
    # [d_in_pad+h_pad:+h_pad) = W3^T; all zero-padded to 128 lanes.
    w_slab = jnp.zeros((d_in_pad + 2 * h_pad, h_pad), jnp.float32)
    w_slab = w_slab.at[:input_size, :interm].set(w1.T)
    w_slab = w_slab.at[d_in_pad:d_in_pad + interm, :interm].set(w2.T)
    w_slab = w_slab.at[d_in_pad + h_pad:d_in_pad + h_pad + interm, :n_out].set(w3.T)

    # Packed BN/bias slab: rows = (gamma1, beta1, gamma2, beta2, b3).
    # PyTorch default init: gamma=1, beta=0.  Padded lanes are 0 so padded
    # activation columns stay identically zero through the whole network.
    p_slab = jnp.zeros((5, h_pad), jnp.float32)
    p_slab = p_slab.at[0, :interm].set(1.0)   # gamma1
    p_slab = p_slab.at[2, :interm].set(1.0)   # gamma2
    p_slab = p_slab.at[4, :n_out].set(b3)     # b3

    return (w_slab, p_slab, d_in_pad, h_pad, n_out)


if __name__ == "__main__":
    key = jax.random.PRNGKey(0)
    k_x, k_p = jax.random.split(key)

    batch = 8
    input_size = 16
    interm_layer_size = 32

    x = jax.random.normal(k_x, (batch, input_size), jnp.float32)
    params = init_params(k_p, input_size, interm_layer_size)

    y = mlp_forward(x, params)
    jax.block_until_ready(y)

    assert y.shape == (batch, 6), y.shape
    print("KERNEL_OK")
</pallas_src>

<mosaic_0001>
module attributes {stable_mosaic.version = 11 : i64} {
  func.func @kernel(%arg0: memref<8x16xf32, #tpu.memory_space<vmem>>, %arg1: memref<272x128xf32, #tpu.memory_space<vmem>>, %arg2: memref<5x128xf32, #tpu.memory_space<vmem>>, %arg3: memref<8x128xf32, #tpu.memory_space<vmem>>) attributes {dimension_semantics = [], scalar_prefetch = 0 : i64, scratch_operands = 0 : i64, tpu.core_type = #tpu.core_type<tc>} {
    %c0 = arith.constant 0 : index
    %c0_0 = arith.constant 0 : index
    %0 = vector.load %arg0[%c0, %c0_0] : memref<8x16xf32, #tpu.memory_space<vmem>>, vector<8x16xf32>
    %c0_1 = arith.constant 0 : index
    %c0_2 = arith.constant 0 : index
    %1 = vector.load %arg1[%c0_1, %c0_2] : memref<272x128xf32, #tpu.memory_space<vmem>>, vector<16x128xf32>
    %c16 = arith.constant 16 : index
    %c0_3 = arith.constant 0 : index
    %2 = vector.load %arg1[%c16, %c0_3] : memref<272x128xf32, #tpu.memory_space<vmem>>, vector<128x128xf32>
    %c144 = arith.constant 144 : index
    %c0_4 = arith.constant 0 : index
    %3 = vector.load %arg1[%c144, %c0_4] : memref<272x128xf32, #tpu.memory_space<vmem>>, vector<128x128xf32>
    %c0_5 = arith.constant 0 : index
    %c0_6 = arith.constant 0 : index
    %4 = vector.load %arg2[%c0_5, %c0_6] : memref<5x128xf32, #tpu.memory_space<vmem>>, vector<1x128xf32>
    %c1 = arith.constant 1 : index
    %c0_7 = arith.constant 0 : index
    %5 = vector.load %arg2[%c1, %c0_7] : memref<5x128xf32, #tpu.memory_space<vmem>>, vector<1x128xf32>
    %c2 = arith.constant 2 : index
    %c0_8 = arith.constant 0 : index
    %6 = vector.load %arg2[%c2, %c0_8] : memref<5x128xf32, #tpu.memory_space<vmem>>, vector<1x128xf32>
    %c3 = arith.constant 3 : index
    %c0_9 = arith.constant 0 : index
    %7 = vector.load %arg2[%c3, %c0_9] : memref<5x128xf32, #tpu.memory_space<vmem>>, vector<1x128xf32>
    %c4 = arith.constant 4 : index
    %c0_10 = arith.constant 0 : index
    %8 = vector.load %arg2[%c4, %c0_10] : memref<5x128xf32, #tpu.memory_space<vmem>>, vector<1x128xf32>
    %cst = arith.constant dense<0.000000e+00> : vector<8x128xf32>
    %9 = tpu.matmul %0, %1, %cst {dimension_numbers = #tpu.dot_dimension_numbers<[1], [0], [0], [1], [0, 0, 1, 1], [], []>} : vector<8x16xf32>, vector<16x128xf32>, vector<8x128xf32> -> vector<8x128xf32>
    %cst_11 = arith.constant dense<0.000000e+00> : vector<128xf32>
    %10 = vector.multi_reduction <add>, %9, %cst_11 [0] : vector<8x128xf32> to vector<128xf32>
    %11 = vector.shape_cast %10 : vector<128xf32> to vector<1x128xf32>
    %12 = arith.mulf %9, %9 : vector<8x128xf32>
    %cst_12 = arith.constant dense<0.000000e+00> : vector<128xf32>
    %13 = vector.multi_reduction <add>, %12, %cst_12 [0] : vector<8x128xf32> to vector<128xf32>
    %14 = vector.shape_cast %13 : vector<128xf32> to vector<1x128xf32>
    %cst_13 = arith.constant 1.250000e-01 : f32
    %15 = vector.broadcast %cst_13 : f32 to vector<1x128xf32>
    %16 = arith.mulf %11, %15 : vector<1x128xf32>
    %cst_14 = arith.constant 1.250000e-01 : f32
    %17 = vector.broadcast %cst_14 : f32 to vector<1x128xf32>
    %18 = arith.mulf %14, %17 : vector<1x128xf32>
    %19 = arith.mulf %16, %16 : vector<1x128xf32>
    %20 = arith.subf %18, %19 : vector<1x128xf32>
    %cst_15 = arith.constant 0.000000e+00 : f32
    %21 = vector.broadcast %cst_15 : f32 to vector<1x128xf32>
    %22 = arith.maximumf %20, %21 : vector<1x128xf32>
    %cst_16 = arith.constant 9.99999974E-6 : f32
    %23 = vector.broadcast %cst_16 : f32 to vector<1x128xf32>
    %24 = arith.addf %22, %23 : vector<1x128xf32>
    %25 = math.rsqrt %24 : vector<1x128xf32>
    %26 = arith.mulf %4, %25 : vector<1x128xf32>
    %27 = arith.mulf %16, %26 : vector<1x128xf32>
    %28 = arith.subf %5, %27 : vector<1x128xf32>
    %29 = vector.broadcast %26 : vector<1x128xf32> to vector<8x128xf32>
    %30 = arith.mulf %9, %29 : vector<8x128xf32>
    %31 = vector.broadcast %28 : vector<1x128xf32> to vector<8x128xf32>
    %32 = arith.addf %30, %31 : vector<8x128xf32>
    %cst_17 = arith.constant 0.000000e+00 : f32
    %33 = vector.broadcast %cst_17 : f32 to vector<8x128xf32>
    %34 = arith.maximumf %32, %33 : vector<8x128xf32>
    %cst_18 = arith.constant dense<0.000000e+00> : vector<8x128xf32>
    %35 = tpu.matmul %34, %2, %cst_18 {dimension_numbers = #tpu.dot_dimension_numbers<[1], [0], [0], [1], [0, 0, 1, 1], [], []>} : vector<8x128xf32>, vector<128x128xf32>, vector<8x128xf32> -> vector<8x128xf32>
    %cst_19 = arith.constant dense<0.000000e+00> : vector<128xf32>
    %36 = vector.multi_reduction <add>, %35, %cst_19 [0] : vector<8x128xf32> to vector<128xf32>
    %37 = vector.shape_cast %36 : vector<128xf32> to vector<1x128xf32>
    %38 = arith.mulf %35, %35 : vector<8x128xf32>
    %cst_20 = arith.constant dense<0.000000e+00> : vector<128xf32>
    %39 = vector.multi_reduction <add>, %38, %cst_20 [0] : vector<8x128xf32> to vector<128xf32>
    %40 = vector.shape_cast %39 : vector<128xf32> to vector<1x128xf32>
    %cst_21 = arith.constant 1.250000e-01 : f32
    %41 = vector.broadcast %cst_21 : f32 to vector<1x128xf32>
    %42 = arith.mulf %37, %41 : vector<1x128xf32>
    %cst_22 = arith.constant 1.250000e-01 : f32
    %43 = vector.broadcast %cst_22 : f32 to vector<1x128xf32>
    %44 = arith.mulf %40, %43 : vector<1x128xf32>
    %45 = arith.mulf %42, %42 : vector<1x128xf32>
    %46 = arith.subf %44, %45 : vector<1x128xf32>
    %cst_23 = arith.constant 0.000000e+00 : f32
    %47 = vector.broadcast %cst_23 : f32 to vector<1x128xf32>
    %48 = arith.maximumf %46, %47 : vector<1x128xf32>
    %cst_24 = arith.constant 9.99999974E-6 : f32
    %49 = vector.broadcast %cst_24 : f32 to vector<1x128xf32>
    %50 = arith.addf %48, %49 : vector<1x128xf32>
    %51 = math.rsqrt %50 : vector<1x128xf32>
    %52 = arith.mulf %6, %51 : vector<1x128xf32>
    %53 = arith.mulf %42, %52 : vector<1x128xf32>
    %54 = arith.subf %7, %53 : vector<1x128xf32>
    %55 = vector.broadcast %52 : vector<1x128xf32> to vector<8x128xf32>
    %56 = arith.mulf %35, %55 : vector<8x128xf32>
    %57 = vector.broadcast %54 : vector<1x128xf32> to vector<8x128xf32>
    %58 = arith.addf %56, %57 : vector<8x128xf32>
    %cst_25 = arith.constant 0.000000e+00 : f32
    %59 = vector.broadcast %cst_25 : f32 to vector<8x128xf32>
    %60 = arith.maximumf %58, %59 : vector<8x128xf32>
    %cst_26 = arith.constant dense<0.000000e+00> : vector<8x128xf32>
    %61 = tpu.matmul %60, %3, %cst_26 {dimension_numbers = #tpu.dot_dimension_numbers<[1], [0], [0], [1], [0, 0, 1, 1], [], []>} : vector<8x128xf32>, vector<128x128xf32>, vector<8x128xf32> -> vector<8x128xf32>
    %62 = vector.broadcast %8 : vector<1x128xf32> to vector<8x128xf32>
    %63 = arith.addf %61, %62 : vector<8x128xf32>
    %c0_27 = arith.constant 0 : index
    %c0_28 = arith.constant 0 : index
    %64 = vector.load %arg3[%c0_27, %c0_28] : memref<8x128xf32, #tpu.memory_space<vmem>>, vector<8x128xf32>
    tpu.vector_store %arg3[%c0_27, %c0_28], %63 {strides = array<i32>} : memref<8x128xf32, #tpu.memory_space<vmem>>, vector<8x128xf32>,
    return
  }
}

</mosaic_0001>

<bundles_post_ra>
// kernel: tpu_custom_call.1
= control target key start
LH: loop header
LB: loop body
LE: loop exit
PB: predicated region body
PF: predicated region fallthrough
CT: control target
= control target key end

     0   :  { %8 = vsyncpa [#allocation3], 0  ;;  %s692_s0 = inlined_call_operand.hbm [shape: f32[8,16], index: 0, kind: input, shape index: {}]   ;;  %s693_s1 = inlined_call_operand.hbm [shape: f32[272,128], index: 1, kind: input, shape index: {}]   ;;  %s694_s2 = inlined_call_operand.hbm [shape: f32[5,128], index: 2, kind: input, shape index: {}]   ;;  %s695_s3 = inlined_call_operand.hbm [shape: f32[8,128], index: 3, kind: output, shape index: {}]  }
   0x1   :  { %9 = vsyncpa [#allocation6], 0 }
   0x2   :  { %10 = vsyncpa [#allocation4], 0  ;;  %s609_s12 = smov [#allocation5]  }
   0x3   :  { %s26_s13 = sshll.u32 %s609_s12, 4  ;;  %s27_s13 = int_to_ptr.vmem [resolvable:$true] %s26_s13 }
   0x4   :  { %s531_s14 = scalar_lea.vmem %s27_s13, 4352  ;;  %p536_p1 = scmp.lt.s32.totalorder %s27_s13, %s27_s13 }
   0x5   :  { %p532_p0 = scmp.ne.s32.totalorder %s27_s13, %s531_s14  ;;  %p537_p2 = scmp.lt.s32.totalorder %s531_s14, %s531_s14 }
   0x7   :  { %p538_p3 = por %p537_p2, %p536_p1 }
   0x9   :  { %p539_p4 = pnand %p538_p3, %p532_p0 }
   0xb   :  { %542 = shalt.err (!%p539_p4)
}
   0xc   :  { %s610_s15 = smov 128   ;;  %s611_s16 = smov 8  }
   0xd   :  { %32 = dma.hbm_to_vmem [thread:$0]  %s693_s1, 4352, %s27_s13, [#allocation6], %s610_s15, %s610_s15, %s611_s16  }
   0xe   :  { %s612_s19 = smov [#allocation2]   ;;  %s613_s21 = smov [#allocation7]  }
   0xf   :  { %s17_s20 = sshll.u32 %s612_s19, 4  ;;  %s39_s22 = sshll.u32 %s613_s21, 4  ;;  %s18_s20 = int_to_ptr.vmem [resolvable:$true] %s17_s20  ;;  %s40_s22 = int_to_ptr.vmem [resolvable:$true] %s39_s22 }
  0x10   :  { %s551_s23 = scalar_lea.vmem %s18_s20, 128  ;;  %p556_p6 = scmp.lt.s32.totalorder %s18_s20, %s18_s20 }
  0x11   :  { %p552_p5 = scmp.ne.s32.totalorder %s18_s20, %s551_s23  ;;  %p557_p7 = scmp.lt.s32.totalorder %s551_s23, %s551_s23 }
  0x13   :  { %p558_p8 = por %p557_p7, %p556_p6 }
  0x15   :  { %p559_p9 = pnand %p558_p8, %p552_p5 }
  0x17   :  { %562 = shalt.err (!%p559_p9)
}
  0x18   :  { %20 = dma.hbm_to_vmem [thread:$0]  %s692_s0, 128, %s18_s20, [#allocation3]  }
  0x19   :  { %s571_s26 = scalar_lea.vmem %s40_s22, 128  ;;  %p576_p11 = scmp.lt.s32.totalorder %s40_s22, %s40_s22 }
  0x1a   :  { %p572_p10 = scmp.ne.s32.totalorder %s40_s22, %s571_s26  ;;  %p577_p12 = scmp.lt.s32.totalorder %s571_s26, %s571_s26 }
  0x1c   :  { %p578_p13 = por %p577_p12, %p576_p11 }
  0x1e   :  { %p579_p0 = pnand %p578_p13, %p572_p10 }
  0x20   :  { %582 = shalt.err (!%p579_p0)
}
  0x21   :  { %42 = dma.hbm_to_vmem [thread:$0]  %s694_s2, 128, %s40_s22, [#allocation6]  }
  0x22   :  { %603 = dma.done.wait [#allocation3], 128  }
  0x23   :  { %604 = vsyncadd [#allocation3], 4294967168 }
  0x24   :  { %605 = dma.done.wait [#allocation6], 4480  }
  0x25   :  { %606 = vsyncadd [#allocation6], 4294962816  ;;  %v614_v0 = vmov 0.0   ;;  %vm615_vm0 = vmmov 0   ;;  %v54_v1 = vld [vmem:[#allocation5 + $0x8] sm:$0xff]  ;;  %v53_v2 = vld [vmem:[#allocation5] sm:$0xff]  ;;  %v189_v41 = vlaneseq }
  0x26   :  { %434 = vmatprep.subr.mxu0 %v614_v0  ;;  %438 = vmatprep.mubr.msk.f32.mxu0 %vm615_vm0, %v614_v0  ;;  %v52_v3 = vld [vmem:[#allocation2] sm:$0xff]  ;;  %vm92_vm1 = vcmask 130048   ;;  %v70_v4 = vld [vmem:[#allocation5 + $0x88] sm:$0xff]  ;;  %v69_v5 = vld [vmem:[#allocation5 + $0x80] sm:$0xff]  ;;  %s616_s0 = smov [#allocation8]  }
  0x27   :  { %441 = vmatprep.subr.mxu1 %v614_v0  ;;  %473 = vmatprep.mubr.msk.f32.mxu1 %vm615_vm0, %v614_v0  ;;  %v68_v6 = vld [vmem:[#allocation5 + $0x78] sm:$0xff]  ;;  %v67_v7 = vld [vmem:[#allocation5 + $0x70] sm:$0xff]  ;;  %v66_v8 = vld [vmem:[#allocation5 + $0x68] sm:$0xff]  ;;  %v190_v42 = vshrl.u32 %v189_v41, 7  ;;  %s385_s2 = sshll.u32 %s616_s0, 4  ;;  %s386_s2 = int_to_ptr.vmem [resolvable:$true] %s385_s2 }
  0x28   :  { %435 = vmatpush3.msra.mxu0 %v54_v1  ;;  %442 = vmatpush3.msra.mxu1 %v70_v4  ;;  %v65_v9 = vld [vmem:[#allocation5 + $0x60] sm:$0xff]  ;;  %v64_v10 = vld [vmem:[#allocation5 + $0x58] sm:$0xff]  ;;  %v63_v11 = vld [vmem:[#allocation5 + $0x50] sm:$0xff]  ;;  %s583_s28 = scalar_lea.vmem %s386_s2, 128  ;;  %p588_p2 = scmp.lt.s32.totalorder %s386_s2, %s386_s2 }
  0x29   :  { %436 = vmatprep.subr.mxu0 %v614_v0  ;;  %443 = vmatprep.subr.mxu1 %v614_v0  ;;  %v62_v12 = vld [vmem:[#allocation5 + $0x48] sm:$0xff]  ;;  %v61_v13 = vld [vmem:[#allocation5 + $0x40] sm:$0xff]  ;;  %v60_v14 = vld [vmem:[#allocation5 + $0x38] sm:$0xff]  ;;  %v668_v44 = vsub.s32 0, %v190_v42  ;;  %p584_p1 = scmp.ne.s32.totalorder %s386_s2, %s583_s28  ;;  %p589_p3 = scmp.lt.s32.totalorder %s583_s28, %s583_s28 }
  0x2a   :  { %437 = vmatpush3.msra.mxu0 %v53_v2  ;;  %444 = vmatpush3.msra.mxu1 %v69_v5  ;;  %v59_v15 = vld [vmem:[#allocation5 + $0x30] sm:$0xff]  ;;  %v58_v16 = vld [vmem:[#allocation5 + $0x28] sm:$0xff]  ;;  %v57_v17 = vld [vmem:[#allocation5 + $0x20] sm:$0xff] }
  0x2b   :  { %439 = vmatmul.mubr.msk.f32.vlgmr.msra.gmra.mxu0 %vm92_vm1, %v52_v3  ;;  %476 = vmatprep.subr.mxu0 %v614_v0  ;;  %v56_v18 = vld [vmem:[#allocation5 + $0x18] sm:$0xff]  ;;  %v55_v19 = vld [vmem:[#allocation5 + $0x10] sm:$0xff]  ;;  %v86_v55 = vld [vmem:[#allocation5 + $0x108] sm:$0xff]  ;;  %p590_p4 = por %p589_p3, %p588_p2 }
  0x2c   :  { %508 = vmatprep.mubr.msk.f32.mxu0 %vm615_vm0, %v614_v0  ;;  %445 = vmatprep.subr.mxu1 %v614_v0  ;;  %v87_v43 = vld [vmem:[#allocation7] sm:$0x1]  ;;  %v88_v47 = vld [vmem:[#allocation7 + $0x1] sm:$0x1]  ;;  %v85_v56 = vld [vmem:[#allocation5 + $0x100] sm:$0xff] }
  0x2d   :  { %446 = vmatpush3.msra.mxu1 %v68_v6  ;;  %477 = vmatpush3.msra.mxu0 %v86_v55  ;;  %v84_v57 = vld [vmem:[#allocation5 + $0xf8] sm:$0xff]  ;;  %v83_v58 = vld [vmem:[#allocation5 + $0xf0] sm:$0xff]  ;;  %v82_v59 = vld [vmem:[#allocation5 + $0xe8] sm:$0xff]  ;;  %p591_p5 = pnand %p590_p4, %p584_p1 }
  0x2e   :  { %447 = vmatprep.subr.mxu1 %v614_v0  ;;  %478 = vmatprep.subr.mxu0 %v614_v0  ;;  %v81_v60 = vld [vmem:[#allocation5 + $0xe0] sm:$0xff]  ;;  %v80_v61 = vld [vmem:[#allocation5 + $0xd8] sm:$0xff]  ;;  %v79_v62 = vld [vmem:[#allocation5 + $0xd0] sm:$0xff] }
  0x2f   :  { %448 = vmatpush3.msra.mxu1 %v67_v7  ;;  %479 = vmatpush3.msra.mxu0 %v85_v56  ;;  %v78_v63 = vld [vmem:[#allocation5 + $0xc8] sm:$0xff]  ;;  %v77_v1 = vld [vmem:[#allocation5 + $0xc0] sm:$0xff]  ;;  %v76_v2 = vld [vmem:[#allocation5 + $0xb8] sm:$0xff] }
  0x30   :  { %449 = vmatprep.subr.mxu1 %v614_v0  ;;  %480 = vmatprep.subr.mxu0 %v614_v0  ;;  %v75_v3 = vld [vmem:[#allocation5 + $0xb0] sm:$0xff]  ;;  %v74_v4 = vld [vmem:[#allocation5 + $0xa8] sm:$0xff]  ;;  %v73_v5 = vld [vmem:[#allocation5 + $0xa0] sm:$0xff] }
  0x31   :  { %450 = vmatpush3.msra.mxu1 %v66_v8  ;;  %481 = vmatpush3.msra.mxu0 %v84_v57  ;;  %v72_v6 = vld [vmem:[#allocation5 + $0x98] sm:$0xff]  ;;  %v71_v7 = vld [vmem:[#allocation5 + $0x90] sm:$0xff] }
  0x32   :  { %451 = vmatprep.subr.mxu1 %v614_v0  ;;  %482 = vmatprep.subr.mxu0 %v614_v0 }
  0x33   :  { %452 = vmatpush3.msra.mxu1 %v65_v9  ;;  %483 = vmatpush3.msra.mxu0 %v83_v58 }
  0x34   :  { %453 = vmatprep.subr.mxu1 %v614_v0  ;;  %484 = vmatprep.subr.mxu0 %v614_v0 }
  0x35   :  { %454 = vmatpush3.msra.mxu1 %v64_v10  ;;  %485 = vmatpush3.msra.mxu0 %v82_v59 }
  0x36   :  { %455 = vmatprep.subr.mxu1 %v614_v0  ;;  %486 = vmatprep.subr.mxu0 %v614_v0 }
  0x37   :  { %456 = vmatpush3.msra.mxu1 %v63_v11  ;;  %487 = vmatpush3.msra.mxu0 %v81_v60 }
  0x38   :  { %457 = vmatprep.subr.mxu1 %v614_v0  ;;  %488 = vmatprep.subr.mxu0 %v614_v0 }
  0x39   :  { %458 = vmatpush3.msra.mxu1 %v62_v12  ;;  %489 = vmatpush3.msra.mxu0 %v80_v61 }
  0x3a   :  { %459 = vmatprep.subr.mxu1 %v614_v0  ;;  %490 = vmatprep.subr.mxu0 %v614_v0 }
  0x3b   :  { %460 = vmatpush3.msra.mxu1 %v61_v13  ;;  %491 = vmatpush3.msra.mxu0 %v79_v62 }
  0x3c   :  { %461 = vmatprep.subr.mxu1 %v614_v0  ;;  %492 = vmatprep.subr.mxu0 %v614_v0 }
  0x3d   :  { %462 = vmatpush3.msra.mxu1 %v60_v14  ;;  %493 = vmatpush3.msra.mxu0 %v78_v63 }
  0x3e   :  { %463 = vmatprep.subr.mxu1 %v614_v0  ;;  %494 = vmatprep.subr.mxu0 %v614_v0 }
  0x3f   :  { %464 = vmatpush3.msra.mxu1 %v59_v15  ;;  %495 = vmatpush3.msra.mxu0 %v77_v1 }
  0x40   :  { %465 = vmatprep.subr.mxu1 %v614_v0  ;;  %496 = vmatprep.subr.mxu0 %v614_v0 }
  0x41   :  { %466 = vmatpush3.msra.mxu1 %v58_v16  ;;  %497 = vmatpush3.msra.mxu0 %v76_v2 }
  0x42   :  { %467 = vmatprep.subr.mxu1 %v614_v0  ;;  %498 = vmatprep.subr.mxu0 %v614_v0 }
  0x43   :  { %468 = vmatpush3.msra.mxu1 %v57_v17  ;;  %499 = vmatpush3.msra.mxu0 %v75_v3 }
  0x44   :  { %469 = vmatprep.subr.mxu1 %v614_v0  ;;  %500 = vmatprep.subr.mxu0 %v614_v0 }
  0x45   :  { %470 = vmatpush3.msra.mxu1 %v56_v18  ;;  %501 = vmatpush3.msra.mxu0 %v74_v4 }
  0x46   :  { %471 = vmatprep.subr.mxu1 %v614_v0  ;;  %502 = vmatprep.subr.mxu0 %v614_v0 }
  0x47   :  { %472 = vmatpush3.msra.mxu1 %v55_v19  ;;  %503 = vmatpush3.msra.mxu0 %v73_v5 }
  0x48   :  { %504 = vmatprep.subr.mxu0 %v614_v0 }
  0x49   :  { %505 = vmatpush3.msra.mxu0 %v72_v6 }
  0x4a   :  { %506 = vmatprep.subr.mxu0 %v614_v0 }
  0x4b   :  { %507 = vmatpush3.msra.mxu0 %v71_v7 }
  0xeb   :  { %v162_v20 = vpop.f32.mrf.mxu0 }
  0xec   :  { %v166_v21 = vrot.slane %v162_v20, 4  ;;  %v172_v22 = vmul.f32 %v162_v20, %v162_v20 }
  0xed   :  { %v440_v23 = vpop.f32.mrf.mxu0 }
  0xee   :  { %v167_v24 = vadd.f32 %v166_v21, %v162_v20  ;;  %v173_v25 = vrot.slane %v172_v22, 4 }
  0xf0   :  { %v168_v26 = vrot.slane %v167_v24, 2  ;;  %v174_v27 = vadd.f32 %v173_v25, %v172_v22 }
  0xf2   :  { %v169_v28 = vadd.f32 %v168_v26, %v167_v24  ;;  %v175_v29 = vrot.slane %v174_v27, 2 }
  0xf4   :  { %v170_v30 = vrot.slane %v169_v28, 1  ;;  %v176_v31 = vadd.f32 %v175_v29, %v174_v27 }
  0xf6   :  { %v171_v32 = vadd.f32 %v170_v30, %v169_v28  ;;  %v177_v33 = vrot.slane %v176_v31, 1  ;;  %v89_v28 = vld [vmem:[#allocation7 + $0x2] sm:$0x1] }
  0xf8   :  { %v178_v34 = vadd.f32 %v177_v33, %v176_v31  ;;  %v179_v35 = vmul.f32 0.125, %v171_v32  ;;  %v90_v31 = vld [vmem:[#allocation7 + $0x3] sm:$0x1] }
  0xfa   :  { %v180_v36 = vmul.f32 0.125, %v178_v34  ;;  %v181_v37 = vmul.f32 %v179_v35, %v179_v35 }
  0xfc   :  { %v182_v38 = vsub.f32 %v180_v36, %v181_v37 }
  0xfe   :  { %v183_v39 = vmax.f32 %v182_v38, 0.0 }
 0x100   :  { %v184_v40 = vadd.f32 1e-05, %v183_v39  ;;  %v396_v39 = vld [vmem:[#allocation7 + $0x4] ss:$0 sm:$0xff] }
 0x102   :  { %519 = vrsqrt.f32 %v184_v40 }
 0x10f   :  { %v520_v45 = vpop.eup %519 }
 0x110   :  { %v186_v46 = vmul.f32 %v520_v45, %v87_v43 }
 0x112   :  { %v192_v48 = vrot.slane %v186_v46, %v668_v44  ;;  %v187_v49 = vmul.f32 %v186_v46, %v179_v35 }
 0x114   :  { %v188_v50 = vsub.f32 %v88_v47, %v187_v49  ;;  %v193_v51 = vmul.f32 %v192_v48, %v162_v20 }
 0x116   :  { %v197_v52 = vrot.slane %v188_v50, %v668_v44 }
 0x118   :  { %v198_v53 = vadd.f32 %v197_v52, %v193_v51 }
 0x11a   :  { %v199_v54 = vmax.f32 %v198_v53, 0.0 }
 0x11c   :  { %474 = vmatmul.mubr.f32.vlgmr.msra.gmra.mxu1 %v199_v54 }
 0x1dc   :  { %v266_v8 = vpop.f32.mrf.mxu1 }
 0x1dd   :  { %v270_v9 = vrot.slane %v266_v8, 4  ;;  %v276_v10 = vmul.f32 %v266_v8, %v266_v8 }
 0x1de   :  { %v475_v11 = vpop.f32.mrf.mxu1 }
 0x1df   :  { %v271_v12 = vadd.f32 %v270_v9, %v266_v8  ;;  %v277_v13 = vrot.slane %v276_v10, 4 }
 0x1e1   :  { %v272_v14 = vrot.slane %v271_v12, 2  ;;  %v278_v15 = vadd.f32 %v277_v13, %v276_v10 }
 0x1e3   :  { %v273_v16 = vadd.f32 %v272_v14, %v271_v12  ;;  %v279_v17 = vrot.slane %v278_v15, 2 }
 0x1e5   :  { %v274_v18 = vrot.slane %v273_v16, 1  ;;  %v280_v19 = vadd.f32 %v279_v17, %v278_v15 }
 0x1e7   :  { %v275_v20 = vadd.f32 %v274_v18, %v273_v16  ;;  %v281_v21 = vrot.slane %v280_v19, 1 }
 0x1e9   :  { %v282_v22 = vadd.f32 %v281_v21, %v280_v19  ;;  %v283_v23 = vmul.f32 0.125, %v275_v20 }
 0x1eb   :  { %v284_v24 = vmul.f32 0.125, %v282_v22  ;;  %v285_v25 = vmul.f32 %v283_v23, %v283_v23 }
 0x1ed   :  { %v286_v0 = vsub.f32 %v284_v24, %v285_v25 }
 0x1ef   :  { %v287_v26 = vmax.f32 %v286_v0, 0.0 }
 0x1f1   :  { %v288_v27 = vadd.f32 1e-05, %v287_v26 }
 0x1f3   :  { %521 = vrsqrt.f32 %v288_v27 }
 0x200   :  { %v522_v29 = vpop.eup %521 }
 0x201   :  { %v290_v30 = vmul.f32 %v522_v29, %v89_v28 }
 0x203   :  { %v291_v32 = vmul.f32 %v290_v30, %v283_v23  ;;  %v296_v33 = vrot.slane %v290_v30, %v668_v44 }
 0x205   :  { %v292_v34 = vsub.f32 %v90_v31, %v291_v32  ;;  %v297_v35 = vmul.f32 %v296_v33, %v266_v8 }
 0x207   :  { %v301_v36 = vrot.slane %v292_v34, %v668_v44 }
 0x209   :  { %v302_v37 = vadd.f32 %v301_v36, %v297_v35 }
 0x20b   :  { %v303_v38 = vmax.f32 %v302_v37, 0.0 }
 0x20d   :  { %509 = vmatmul.mubr.f32.vlgmr.msra.gmra.mxu0 %v303_v38 }
 0x2cd   :  { %v374_v40 = vpop.f32.mrf.mxu0 }
 0x2ce   :  { %v375_v41 = vadd.f32 %v396_v39, %v374_v40 }
 0x2cf   :  { %v510_v42 = vpop.f32.mrf.mxu0 }
 0x2d0   :  { %378 = vst [vmem:[#allocation8] sm:$0xff] %v375_v41 }
 0x2d1   :  { %594 = shalt.err (!%p591_p5)
}
 0x2d2   :  { %388 = dma.vmem_to_hbm [thread:$0]  %s386_s2, 128, %s695_s3, [#allocation4]  }
 0x2d3   :  { %607 = dma.done.wait [#allocation4], 128  }
 0x2d4   :  { %608 = vsyncadd [#allocation4], 4294967168 }
 0x2d5   :  { %392 = vsyncpa [#allocation3], 1 }
 0x2d6   :  { %393 = vsyncpa [#allocation6], 1 }
 0x2d7   :  { %394 = vsyncpa [#allocation4], 1 }

</bundles_post_ra>
